<compile_context>
chip_gen: v7x
topology: tpu7x:2x2x1
jax: 0.10.0
libtpu: 0.0.40
codegen_flags: <defaults>
</compile_context>

<pallas_src>
import functools

import jax
import jax.numpy as jnp
import numpy as np
from jax.experimental import pallas as pl
from jax.experimental.pallas import tpu as pltpu

HIDDEN = 8
LANE = 128
SUBLANE = 8


def _round_up(x, m):
    return (x + m - 1) // m * m


def ae_kernel(x_ref, w1_ref, b1_ref, w2_ref, b2_ref, o_ref):
    # encoder: h = relu(x @ W1^T + b1)     [tb, D] @ [D, 8] -> [tb, 8]
    x = x_ref[...].astype(jnp.float32)
    h = jnp.dot(x, w1_ref[...], preferred_element_type=jnp.float32)
    h = jnp.maximum(h + b1_ref[...], 0.0)
    # decoder: y = relu(h @ W2^T + b2)     [tb, 8] @ [8, D] -> [tb, D]
    y = jnp.dot(h, w2_ref[...], preferred_element_type=jnp.float32)
    o_ref[...] = jnp.maximum(y + b2_ref[...], 0.0).astype(o_ref.dtype)


def prepare_params(w1, b1, w2, b2):
    """One-time glue (hoisted out of the per-call path): transpose weights to
    matmul-friendly layout and zero-pad the feature dim to a 128-lane multiple.
    Zero padding keeps the math exact; padded output columns are sliced off."""
    d = w1.shape[1]
    d_pad = _round_up(d, LANE)
    w1_t = jnp.zeros((d_pad, HIDDEN), jnp.float32).at[:d, :].set(
        w1.T.astype(jnp.float32))                                  # [D_pad, 8]
    w2_t = jnp.zeros((HIDDEN, d_pad), jnp.float32).at[:, :d].set(
        w2.T.astype(jnp.float32))                                  # [8, D_pad]
    b1_2d = b1.reshape(1, HIDDEN).astype(jnp.float32)              # [1, 8]
    b2_2d = jnp.zeros((1, d_pad), jnp.float32).at[:, :d].set(
        b2.astype(jnp.float32))                                    # [1, D_pad]
    return w1_t, b1_2d, w2_t, b2_2d


@functools.partial(jax.jit, static_argnames=("io_dtype", "tile_b"))
def ae_forward(x_nchw, w1_t, b1_2d, w2_t, b2_2d, *,
               io_dtype=jnp.bfloat16, tile_b=256):
    """x_nchw: [B, C, H, W].  Returns [B, D] (D = C*H*W), like the PyTorch module."""
    B = x_nchw.shape[0]
    D = 1
    for s in x_nchw.shape[1:]:
        D *= s
    D_pad = w1_t.shape[0]
    itemsize = np.dtype(io_dtype).itemsize

    # Pick batch tile: big enough to amortize per-step overhead, small enough
    # that double-buffered (x + out) tiles stay well inside 48 MiB (v7x-safe).
    max_rows = max(SUBLANE, ((8 << 20) // (D_pad * itemsize)) // SUBLANE * SUBLANE)
    tb = min(tile_b, max_rows, _round_up(B, SUBLANE))
    B_pad = _round_up(B, tb)

    x2d = x_nchw.reshape(B, D).astype(io_dtype)
    x2d = jnp.pad(x2d, ((0, B_pad - B), (0, D_pad - D)))

    grid = (B_pad // tb,)
    out_padded = pl.pallas_call(
        ae_kernel,
        out_shape=jax.ShapeDtypeStruct((B_pad, D_pad), io_dtype),
        grid=grid,
        in_specs=[
            pl.BlockSpec((tb, D_pad), lambda i: (i, 0)),       # x: streamed
            pl.BlockSpec((D_pad, HIDDEN), lambda i: (0, 0)),   # W1^T: resident
            pl.BlockSpec((1, HIDDEN), lambda i: (0, 0)),       # b1: resident
            pl.BlockSpec((HIDDEN, D_pad), lambda i: (0, 0)),   # W2^T: resident
            pl.BlockSpec((1, D_pad), lambda i: (0, 0)),        # b2: resident
        ],
        out_specs=pl.BlockSpec((tb, D_pad), lambda i: (i, 0)),  # out: streamed
        compiler_params=pltpu.CompilerParams(
            dimension_semantics=("parallel",),   # shard batch tiles across TCs (v7x)
            vmem_limit_bytes=48 << 20,           # fits v7x's 64 MiB, plenty on v5e/v6e
        ),
        cost_estimate=pl.CostEstimate(
            flops=4 * B_pad * D_pad * HIDDEN,
            transcendentals=0,
            bytes_accessed=(2 * B_pad * D_pad * itemsize        # x in + out
                            + 2 * D_pad * HIDDEN * 4            # weights
                            + (D_pad + HIDDEN) * 4),            # biases
        ),
    )(x2d, w1_t, b1_2d, w2_t, b2_2d)

    return out_padded[:B, :D]


def init_params(key, input_size):
    """Deterministic init mimicking nn.Linear default (uniform +/- 1/sqrt(fan_in))."""
    k1, k2, k3, k4 = jax.random.split(key, 4)
    bound1 = 1.0 / jnp.sqrt(jnp.float32(input_size))
    bound2 = 1.0 / jnp.sqrt(jnp.float32(HIDDEN))
    w1 = jax.random.uniform(k1, (HIDDEN, input_size), jnp.float32, -bound1, bound1)
    b1 = jax.random.uniform(k2, (HIDDEN,), jnp.float32, -bound1, bound1)
    w2 = jax.random.uniform(k3, (input_size, HIDDEN), jnp.float32, -bound2, bound2)
    b2 = jax.random.uniform(k4, (input_size,), jnp.float32, -bound2, bound2)
    return w1, b1, w2, b2


def reference_forward(x_nchw, w1, b1, w2, b2):
    B = x_nchw.shape[0]
    x = x_nchw.reshape(B, -1)
    h = jnp.maximum(x @ w1.T + b1, 0.0)
    y = jnp.maximum(h @ w2.T + b2, 0.0)
    return y


if __name__ == "__main__":
    key = jax.random.PRNGKey(0)
    kx, kp = jax.random.split(key)

    # small shapes consistent with the module's flatten-then-MLP forward
    B, C, H, W = 2, 1, 16, 16
    input_size = C * H * W  # 256

    x = jax.random.normal(kx, (B, C, H, W), jnp.float32)
    w1, b1, w2, b2 = init_params(kp, input_size)

    # hoisted once: weight transposes / bias reshapes / D padding
    params = prepare_params(w1, b1, w2, b2)

    # 1) f32-I/O path: strict check vs pure-JAX reference.
    out_f32 = ae_forward(x, *params, io_dtype=jnp.float32)
    out_f32 = jax.block_until_ready(out_f32)
    ref_f32 = reference_forward(x, w1, b1, w2, b2)
    assert out_f32.shape == (B, input_size)
    assert jnp.allclose(out_f32, ref_f32, atol=1e-5, rtol=1e-5), "f32 mismatch vs reference"

    # 2) bf16-I/O path (perf default: halves HBM traffic; math stays f32 in-kernel).
    out_bf16 = ae_forward(x, *params, io_dtype=jnp.bfloat16)
    out_bf16 = jax.block_until_ready(out_bf16)
    x_rounded = x.astype(jnp.bfloat16).astype(jnp.float32)
    ref_bf16 = reference_forward(x_rounded, w1, b1, w2, b2)
    assert out_bf16.shape == (B, input_size)
    assert jnp.allclose(out_bf16.astype(jnp.float32), ref_bf16, atol=1e-2, rtol=1e-2), \
        "bf16 mismatch vs reference"

    print("KERNEL_OK")
</pallas_src>

<mosaic_0001>
module attributes {stable_mosaic.version = 11 : i64} {
  func.func @ae_kernel(%arg0: i32, %arg1: memref<8x256xf32, #tpu.memory_space<vmem>>, %arg2: memref<256x8xf32, #tpu.memory_space<vmem>>, %arg3: memref<1x8xf32, #tpu.memory_space<vmem>>, %arg4: memref<8x256xf32, #tpu.memory_space<vmem>>, %arg5: memref<1x256xf32, #tpu.memory_space<vmem>>, %arg6: memref<8x256xf32, #tpu.memory_space<vmem>>) attributes {dimension_semantics = [#tpu.dimension_semantics<parallel>], iteration_bounds = array<i64: 1>, scalar_prefetch = 0 : i64, scratch_operands = 0 : i64, tpu.core_type = #tpu.core_type<tc>, window_params = [{transform_indices = @transform_0, window_bounds = array<i64: 8, 256>}, {pipeline_mode = #tpu.pipeline_mode<synchronous>, transform_indices = @transform_1, window_bounds = array<i64: 256, 8>}, {pipeline_mode = #tpu.pipeline_mode<synchronous>, transform_indices = @transform_2, window_bounds = array<i64: 1, 8>}, {pipeline_mode = #tpu.pipeline_mode<synchronous>, transform_indices = @transform_3, window_bounds = array<i64: 8, 256>}, {pipeline_mode = #tpu.pipeline_mode<synchronous>, transform_indices = @transform_4, window_bounds = array<i64: 1, 256>}, {transform_indices = @transform_5, window_bounds = array<i64: 8, 256>}]} {
    %c0 = arith.constant 0 : index
    %c0_0 = arith.constant 0 : index
    %0 = vector.load %arg1[%c0, %c0_0] : memref<8x256xf32, #tpu.memory_space<vmem>>, vector<8x256xf32>
    %c0_1 = arith.constant 0 : index
    %c0_2 = arith.constant 0 : index
    %1 = vector.load %arg2[%c0_1, %c0_2] : memref<256x8xf32, #tpu.memory_space<vmem>>, vector<256x8xf32>
    %cst = arith.constant dense<0.000000e+00> : vector<8x8xf32>
    %2 = tpu.matmul %0, %1, %cst {dimension_numbers = #tpu.dot_dimension_numbers<[1], [0], [0], [1], [0, 0, 1, 1], [], []>} : vector<8x256xf32>, vector<256x8xf32>, vector<8x8xf32> -> vector<8x8xf32>
    %c0_3 = arith.constant 0 : index
    %c0_4 = arith.constant 0 : index
    %3 = vector.load %arg3[%c0_3, %c0_4] : memref<1x8xf32, #tpu.memory_space<vmem>>, vector<1x8xf32>
    %4 = vector.broadcast %3 : vector<1x8xf32> to vector<8x8xf32>
    %5 = arith.addf %2, %4 : vector<8x8xf32>
    %cst_5 = arith.constant 0.000000e+00 : f32
    %6 = vector.broadcast %cst_5 : f32 to vector<8x8xf32>
    %7 = arith.maximumf %5, %6 : vector<8x8xf32>
    %c0_6 = arith.constant 0 : index
    %c0_7 = arith.constant 0 : index
    %8 = vector.load %arg4[%c0_6, %c0_7] : memref<8x256xf32, #tpu.memory_space<vmem>>, vector<8x256xf32>
    %cst_8 = arith.constant dense<0.000000e+00> : vector<8x256xf32>
    %9 = tpu.matmul %7, %8, %cst_8 {dimension_numbers = #tpu.dot_dimension_numbers<[1], [0], [0], [1], [0, 0, 1, 1], [], []>} : vector<8x8xf32>, vector<8x256xf32>, vector<8x256xf32> -> vector<8x256xf32>
    %c0_9 = arith.constant 0 : index
    %c0_10 = arith.constant 0 : index
    %10 = vector.load %arg5[%c0_9, %c0_10] : memref<1x256xf32, #tpu.memory_space<vmem>>, vector<1x256xf32>
    %11 = vector.broadcast %10 : vector<1x256xf32> to vector<8x256xf32>
    %12 = arith.addf %9, %11 : vector<8x256xf32>
    %cst_11 = arith.constant 0.000000e+00 : f32
    %13 = vector.broadcast %cst_11 : f32 to vector<8x256xf32>
    %14 = arith.maximumf %12, %13 : vector<8x256xf32>
    %c0_12 = arith.constant 0 : index
    %c0_13 = arith.constant 0 : index
    %15 = vector.load %arg6[%c0_12, %c0_13] : memref<8x256xf32, #tpu.memory_space<vmem>>, vector<8x256xf32>
    tpu.vector_store %arg6[%c0_12, %c0_13], %14 {strides = array<i32>} : memref<8x256xf32, #tpu.memory_space<vmem>>, vector<8x256xf32>,
    return
  }
  func.func @transform_0(%arg0: i32) -> (i32, i32) {
    %c0_i32 = arith.constant 0 : i32
    %c0_i32_0 = arith.constant 0 : i32
    return %arg0, %c0_i32 : i32, i32
  }
  func.func @transform_1(%arg0: i32) -> (i32, i32) {
    %c0_i32 = arith.constant 0 : i32
    %c0_i32_0 = arith.constant 0 : i32
    %c0_i32_1 = arith.constant 0 : i32
    return %c0_i32, %c0_i32_0 : i32, i32
  }
  func.func @transform_2(%arg0: i32) -> (i32, i32) {
    %c0_i32 = arith.constant 0 : i32
    %c0_i32_0 = arith.constant 0 : i32
    %c0_i32_1 = arith.constant 0 : i32
    return %c0_i32, %c0_i32_0 : i32, i32
  }
  func.func @transform_3(%arg0: i32) -> (i32, i32) {
    %c0_i32 = arith.constant 0 : i32
    %c0_i32_0 = arith.constant 0 : i32
    %c0_i32_1 = arith.constant 0 : i32
    return %c0_i32, %c0_i32_0 : i32, i32
  }
  func.func @transform_4(%arg0: i32) -> (i32, i32) {
    %c0_i32 = arith.constant 0 : i32
    %c0_i32_0 = arith.constant 0 : i32
    %c0_i32_1 = arith.constant 0 : i32
    return %c0_i32, %c0_i32_0 : i32, i32
  }
  func.func @transform_5(%arg0: i32) -> (i32, i32) {
    %c0_i32 = arith.constant 0 : i32
    %c0_i32_0 = arith.constant 0 : i32
    return %arg0, %c0_i32 : i32, i32
  }
}

</mosaic_0001>

<bundles_post_ra>
// kernel: ae_forward.1
= control target key start
LH: loop header
LB: loop body
LE: loop exit
PB: predicated region body
PF: predicated region fallthrough
CT: control target
= control target key end

     0   :  { %v299_v52 = vmov 0.0   ;;  %vm146_vm0 = vcmask 64512   ;;  %v136_v59 = vlaneseq  ;;  %s450_s1 = inlined_call_operand.vmem [shape: f32[256,8], index: 1, kind: input, shape index: {}]   ;;  %s451_s0 = inlined_call_operand.vmem [shape: f32[8,256], index: 0, kind: input, shape index: {}]   ;;  %s452_s3 = inlined_call_operand.vmem [shape: f32[8,256], index: 3, kind: input, shape index: {}]   ;;  %s453_s2 = inlined_call_operand.vmem [shape: f32[1,8], index: 2, kind: input, shape index: {}]   ;;  %s454_s4 = inlined_call_operand.vmem [shape: f32[1,256], index: 4, kind: input, shape index: {}]   ;;  %s455_s5 = inlined_call_operand.vmem [shape: f32[8,256], index: 5, kind: output, shape index: {}]  }
   0x1   :  { %v38_v0 = vld [vmem:[%s450_s1 + $0x80] sm:$0xff]  ;;  %v39_v1 = vld [vmem:[%s450_s1 + $0x88] sm:$0xff]  ;;  %v40_v5 = vld [vmem:[%s450_s1 + $0x90] sm:$0xff]  ;;  %214 = vmatprep.mubr.f32.mxu1 %v299_v52 }
   0x2   :  { %v22_v2 = vld [vmem:[%s450_s1] sm:$0xff]  ;;  %v266_v3 = vpack.c.bf16 %v39_v1, %v38_v0  ;;  %v23_v4 = vld [vmem:[%s450_s1 + $0x8] sm:$0xff]  ;;  %v41_v6 = vld [vmem:[%s450_s1 + $0x98] sm:$0xff]  ;;  %v137_v60 = vshrl.u32 %v136_v59, 7 }
   0x3   :  { %v268_v7 = vpack.c.bf16 %v23_v4, %v22_v2  ;;  %v270_v8 = vpack.c.bf16 %v41_v6, %v40_v5  ;;  %v24_v9 = vld [vmem:[%s450_s1 + $0x10] sm:$0xff]  ;;  %v25_v10 = vld [vmem:[%s450_s1 + $0x18] sm:$0xff]  ;;  %v42_v11 = vld [vmem:[%s450_s1 + $0xa0] sm:$0xff] }
   0x4   :  { %267 = vmatprep.subr.bf16.mxu0 %v266_v3  ;;  %v43_v12 = vld [vmem:[%s450_s1 + $0xa8] sm:$0xff]  ;;  %v272_v13 = vpack.c.bf16 %v25_v10, %v24_v9  ;;  %v26_v15 = vld [vmem:[%s450_s1 + $0x20] sm:$0xff]  ;;  %v44_v17 = vld [vmem:[%s450_s1 + $0xb0] sm:$0xff]  ;;  %v138_v61 = vsub.s32 0, %v137_v60  ;;  %v142_v63 = vsub.s32 1, %v137_v60 }
   0x5   :  { %269 = vmatpush3.bf16.msra.mxu0 %v268_v7  ;;  %v274_v14 = vpack.c.bf16 %v43_v12, %v42_v11  ;;  %v27_v16 = vld [vmem:[%s450_s1 + $0x28] sm:$0xff]  ;;  %v45_v18 = vld [vmem:[%s450_s1 + $0xb8] sm:$0xff]  ;;  %v28_v21 = vld [vmem:[%s450_s1 + $0x30] sm:$0xff] }
   0x6   :  { %271 = vmatprep.subr.bf16.mxu0 %v270_v8  ;;  %v276_v19 = vpack.c.bf16 %v27_v16, %v26_v15  ;;  %v278_v20 = vpack.c.bf16 %v45_v18, %v44_v17  ;;  %v29_v22 = vld [vmem:[%s450_s1 + $0x38] sm:$0xff]  ;;  %v46_v23 = vld [vmem:[%s450_s1 + $0xc0] sm:$0xff]  ;;  %v47_v24 = vld [vmem:[%s450_s1 + $0xc8] sm:$0xff] }
   0x7   :  { %v21_v25 = vld [vmem:[%s451_s0 + $0x8] sm:$0xff]  ;;  %v280_v26 = vpack.c.bf16 %v29_v22, %v28_v21  ;;  %v282_v27 = vpack.c.bf16 %v47_v24, %v46_v23  ;;  %v30_v28 = vld [vmem:[%s450_s1 + $0x40] sm:$0xff]  ;;  %v48_v30 = vld [vmem:[%s450_s1 + $0xd0] sm:$0xff] }
   0x8   :  { %125 = vmatprep.mubr.f32.mxu0 %v21_v25  ;;  %v31_v29 = vld [vmem:[%s450_s1 + $0x48] sm:$0xff]  ;;  %v49_v31 = vld [vmem:[%s450_s1 + $0xd8] sm:$0xff]  ;;  %v32_v34 = vld [vmem:[%s450_s1 + $0x50] sm:$0xff] }
   0x9   :  { %273 = vmatpush3.bf16.msra.mxu0 %v272_v13  ;;  %v284_v32 = vpack.c.bf16 %v31_v29, %v30_v28  ;;  %v286_v33 = vpack.c.bf16 %v49_v31, %v48_v30  ;;  %v33_v35 = vld [vmem:[%s450_s1 + $0x58] sm:$0xff]  ;;  %v50_v36 = vld [vmem:[%s450_s1 + $0xe0] sm:$0xff]  ;;  %v51_v37 = vld [vmem:[%s450_s1 + $0xe8] sm:$0xff] }
   0xa   :  { %275 = vmatprep.subr.bf16.mxu0 %v274_v14  ;;  %v288_v38 = vpack.c.bf16 %v33_v35, %v32_v34  ;;  %v290_v39 = vpack.c.bf16 %v51_v37, %v50_v36  ;;  %v34_v40 = vld [vmem:[%s450_s1 + $0x60] sm:$0xff]  ;;  %v35_v41 = vld [vmem:[%s450_s1 + $0x68] sm:$0xff]  ;;  %v52_v42 = vld [vmem:[%s450_s1 + $0xf0] sm:$0xff] }
   0xb   :  { %v53_v43 = vld [vmem:[%s450_s1 + $0xf8] sm:$0xff]  ;;  %v292_v44 = vpack.c.bf16 %v35_v41, %v34_v40  ;;  %v36_v46 = vld [vmem:[%s450_s1 + $0x70] sm:$0xff]  ;;  %v20_v49 = vld [vmem:[%s451_s0] sm:$0xff] }
   0xc   :  { %v294_v45 = vpack.c.bf16 %v53_v43, %v52_v42  ;;  %v37_v47 = vld [vmem:[%s450_s1 + $0x78] sm:$0xff]  ;;  %v133_v50 = vld [vmem:[%s452_s3 + $0x8] sm:$0xff]  ;;  %v132_v51 = vld [vmem:[%s452_s3] sm:$0xff] }
   0xd   :  { %277 = vmatpush3.bf16.msra.mxu0 %v276_v19  ;;  %v296_v48 = vpack.c.bf16 %v37_v47, %v36_v46  ;;  %150 = vmatprep.subr.mxu1 %v133_v50  ;;  %v229_v54 = vld [vmem:[%s453_s2] ss:$0 sm:$0xff] }
   0xe   :  { %279 = vmatprep.subr.bf16.mxu0 %v278_v20  ;;  %151 = vmatpush1.msra.mxu1 %v132_v51  ;;  %v134_v62 = vld [vmem:[%s454_s4] sm:$0x3] }
   0xf   :  { %v139_v0 = vrot.slane %v134_v62, %v138_v61  ;;  %v143_v1 = vrot.slane %v134_v62, %v142_v63 }
  0x11   :  { %281 = vmatpush3.bf16.msra.mxu0 %v280_v26 }
  0x12   :  { %283 = vmatprep.subr.bf16.mxu0 %v282_v27 }
  0x15   :  { %285 = vmatpush3.bf16.msra.mxu0 %v284_v32 }
  0x16   :  { %287 = vmatprep.subr.bf16.mxu0 %v286_v33 }
  0x19   :  { %289 = vmatpush3.bf16.msra.mxu0 %v288_v38 }
  0x1a   :  { %291 = vmatprep.subr.bf16.mxu0 %v290_v39 }
  0x1d   :  { %293 = vmatpush3.bf16.msra.mxu0 %v292_v44 }
  0x1e   :  { %295 = vmatprep.subr.bf16.mxu0 %v294_v45 }
  0x21   :  { %297 = vmatpush3.bf16.msra.mxu0 %v296_v48 }
  0x24   :  { %126 = vmatmul.mubr.f32.vlgmr.msra.gmra.mrb[0].mxu0 %v20_v49 }
  0xf7   :  { %v263_v53 = vpop.f32.mrb[0].mxu0 }
  0xf8   :  { %v264_v55 = vpop.f32.mrb[1].mxu0 }
  0xf9   :  { %v265_v56 = vadd.f32 %v264_v55, %v263_v53 }
  0xfb   :  { %v128_v57 = vadd.f32 %v265_v56, %v229_v54 }
  0xfd   :  { %v131_v58 = vmax.f32 %v128_v57, 0.0 }
  0xff   :  { %230 = vmatmul.mubr.msk.f32.vlgmr.msra.gmra.mrb[0].mxu1 %vm146_vm0, %v131_v58 }
 0x1d2   :  { %v216_v2 = vpop.f32.mrb[0].mxu1 }
 0x1d3   :  { %v217_v3 = vadd.f32 %v216_v2, %v139_v0  ;;  %v218_v4 = vpop.f32.mrb[1].mxu1 }
 0x1d4   :  { %v219_v5 = vadd.f32 %v218_v4, %v143_v1 }
 0x1d5   :  { %v221_v6 = vmax.f32 %v217_v3, 0.0 }
 0x1d6   :  { %v222_v7 = vmax.f32 %v219_v5, 0.0 }
 0x1d7   :  { %223 = vst [vmem:[%s455_s5] sm:$0xff] %v221_v6 }
 0x1d8   :  { %224 = vst [vmem:[%s455_s5 + $0x8] sm:$0xff] %v222_v7 }

</bundles_post_ra>
